<compile_context>
chip_gen: v6e
topology: v6e:2x2x1
jax: 0.10.0
libtpu: 0.0.40
codegen_flags: <defaults>
</compile_context>

<pallas_src>
import functools

import jax
import jax.numpy as jnp
from jax.experimental import pallas as pl
from jax.experimental.pallas import tpu as pltpu


def recurrent_kernel(x_ref, w_in_ref, w_h_ref, b_ref, w_out_ref, b_out_ref,
                     out_ref, *, n_steps, length, stride, n_channels, path_len):
    """Single-invocation, fully-unrolled recurrent kernel (no VMEM scratch).

    x_ref     : (B, C*P)  raw signal, one contiguous row per batch element
    w_in_ref  : (CL, H)   input projection weight
    w_h_ref   : (H, H)    recurrent weight
    b_ref     : (1, H)    recurrent bias
    w_out_ref : (H, O)    output projection weight
    b_out_ref : (1, O)    output projection bias
    out_ref   : (T*B, O)  per-window outputs, written once as a single slab
    """
    x = x_ref[...]                      # one load; everything below stays in vregs
    b_rows = x.shape[0]

    # ---- Prologue: build all T windows with static lane slices (the Window +
    #      flatten transformation), then ONE batched input projection on the
    #      MXU with the bias folded in.  All off the serial critical path. ----
    windows = []
    for t in range(n_steps):
        off = t * stride
        parts = [x[:, c * path_len + off: c * path_len + off + length]
                 for c in range(n_channels)]
        windows.append(jnp.concatenate(parts, axis=1))          # (B, C*L)
    sig_all = jnp.concatenate(windows, axis=0)                   # (T*B, C*L)
    xproj = (jnp.dot(sig_all, w_in_ref[...],
                     preferred_element_type=jnp.float32) + b_ref[...])

    w_h = w_h_ref[...]
    h = w_h.shape[1]

    # ---- Serial recurrence, fully unrolled, entirely in vregs:
    #      per step only  mem @ W_h  ->  + xproj[t]  ->  tanh.
    # TODO(synk): hold W_h in MXU weight registers across steps via
    # pltpu.matmul_push_rhs / matmul_acc_lhs / matmul_pop to avoid any per-step
    # RHS reload; kept jnp.dot here for lowering robustness at tiny shapes.
    mem = jnp.zeros((b_rows, h), jnp.float32)   # torch: zeros(batch, *memory_shape)
    mems = []
    for t in range(n_steps):
        mem = jnp.tanh(
            xproj[t * b_rows:(t + 1) * b_rows, :]
            + jnp.dot(mem, w_h, preferred_element_type=jnp.float32))
        mems.append(mem)
    traj = jnp.concatenate(mems, axis=0)                         # (T*B, H)

    # ---- Epilogue: ONE batched output projection, single slab store. ----
    out_ref[...] = (jnp.dot(traj, w_out_ref[...],
                            preferred_element_type=jnp.float32)
                    + b_out_ref[...]).astype(out_ref.dtype)


@functools.partial(jax.jit, static_argnames=("length", "stride"))
def recurrent_forward(x, w_in, w_h, b, w_out, b_out, *, length, stride):
    B, C, P = x.shape
    T = (P - length) // stride + 1
    if T < 1:
        raise RuntimeError(
            'Recurrent did not iterate over any windows: not enough input data '
            f'for one window. Length of input data is {P}. Length of window is {length}.')
    CL = C * length
    H = w_h.shape[0]
    O = w_out.shape[1]

    # Only wrapper-side pre-kernel op is a free (contiguous) reshape; the window
    # gather / flatten / batch-pad of the previous version now happens inside
    # the kernel as static lane slices.
    x_flat = x.reshape(B, C * P)

    kernel = functools.partial(recurrent_kernel, n_steps=T, length=length,
                               stride=stride, n_channels=C, path_len=P)

    itemsize = 4
    cost = pl.CostEstimate(
        flops=2 * T * B * (CL * H + H * H + H * O),
        transcendentals=T * B * H,
        bytes_accessed=itemsize * (B * C * P + CL * H + H * H + H
                                   + H * O + O + T * B * O),
    )

    # TODO(synk): when B grows, add a batch-parallel grid axis
    # (dimension_semantics=("parallel",)) so v7x's second TensorCore runs half
    # the rows; keep T as the in-kernel unrolled loop, not a grid axis.
    out_flat = pl.pallas_call(
        kernel,
        out_shape=jax.ShapeDtypeStruct((T * B, O), jnp.float32),
        # Single invocation (no grid): ~8 KB resident in VMEM for the whole
        # kernel; weights/biases are fetched exactly once.
        in_specs=[pl.BlockSpec(memory_space=pltpu.MemorySpace.VMEM)] * 6,
        out_specs=pl.BlockSpec(memory_space=pltpu.MemorySpace.VMEM),
        cost_estimate=cost,
    )(x_flat, w_in, w_h, b, w_out, b_out)

    # torch: utils.stack(outs, dim=-1) -> (B, O, T)
    return jnp.transpose(out_flat.reshape(T, B, O), (1, 2, 0))


def reference_forward(x, w_in, w_h, b, w_out, b_out, *, length, stride):
    """Pure-JAX reference mirroring the torch module's forward pass."""
    B, C, P = x.shape
    T = (P - length) // stride + 1
    H = w_h.shape[0]
    mem = jnp.zeros((B, H), jnp.float32)
    outs = []
    for t in range(T):
        win = x[:, :, t * stride:t * stride + length].reshape(B, C * length)
        mem = jnp.tanh(win @ w_in + mem @ w_h + b)
        outs.append(mem @ w_out + b_out)
    return jnp.stack(outs, axis=-1)                   # (B, O, T)


if __name__ == "__main__":
    B, C, P = 2, 4, 16      # (batch, channels, path)
    L, S = 4, 2             # window length / stride -> T = 7 windows
    H, O = 32, 8            # memory (hidden) size, output size
    CL = C * L

    key = jax.random.PRNGKey(0)
    kx, k1, k2, k3, k4, k5 = jax.random.split(key, 6)
    x = jax.random.normal(kx, (B, C, P), jnp.float32)
    w_in = jax.random.normal(k1, (CL, H), jnp.float32) * 0.1
    w_h = jax.random.normal(k2, (H, H), jnp.float32) * 0.1
    b = jax.random.normal(k3, (1, H), jnp.float32) * 0.1
    w_out = jax.random.normal(k4, (H, O), jnp.float32) * 0.1
    b_out = jax.random.normal(k5, (1, O), jnp.float32) * 0.1

    out = recurrent_forward(x, w_in, w_h, b, w_out, b_out, length=L, stride=S)
    out = jax.block_until_ready(out)

    ref = reference_forward(x, w_in, w_h, b, w_out, b_out, length=L, stride=S)
    assert out.shape == (B, O, (P - L) // S + 1), out.shape
    assert jnp.allclose(out, ref, atol=1e-5, rtol=1e-5), float(jnp.max(jnp.abs(out - ref)))

    print("KERNEL_OK")
</pallas_src>

<mosaic_0001>
module attributes {stable_mosaic.version = 11 : i64} {
  func.func @recurrent_kernel(%arg0: memref<2x64xf32, #tpu.memory_space<vmem>>, %arg1: memref<16x32xf32, #tpu.memory_space<vmem>>, %arg2: memref<32x32xf32, #tpu.memory_space<vmem>>, %arg3: memref<1x32xf32, #tpu.memory_space<vmem>>, %arg4: memref<32x8xf32, #tpu.memory_space<vmem>>, %arg5: memref<1x8xf32, #tpu.memory_space<vmem>>, %arg6: memref<14x8xf32, #tpu.memory_space<vmem>>) attributes {dimension_semantics = [], scalar_prefetch = 0 : i64, scratch_operands = 0 : i64, tpu.core_type = #tpu.core_type<tc>} {
    %c0 = arith.constant 0 : index
    %c0_0 = arith.constant 0 : index
    %0 = vector.load %arg0[%c0, %c0_0] : memref<2x64xf32, #tpu.memory_space<vmem>>, vector<2x64xf32>
    %1 = vector.extract_strided_slice %0 {offsets = [0, 0], sizes = [2, 4], strides = [1, 1]} : vector<2x64xf32> to vector<2x4xf32>
    %2 = vector.extract_strided_slice %0 {offsets = [0, 16], sizes = [2, 4], strides = [1, 1]} : vector<2x64xf32> to vector<2x4xf32>
    %3 = vector.extract_strided_slice %0 {offsets = [0, 32], sizes = [2, 4], strides = [1, 1]} : vector<2x64xf32> to vector<2x4xf32>
    %4 = vector.extract_strided_slice %0 {offsets = [0, 48], sizes = [2, 4], strides = [1, 1]} : vector<2x64xf32> to vector<2x4xf32>
    %5 = tpu.concatenate %1, %2, %3, %4 in 1 : vector<2x4xf32>, vector<2x4xf32>, vector<2x4xf32>, vector<2x4xf32> -> vector<2x16xf32>
    %6 = vector.extract_strided_slice %0 {offsets = [0, 2], sizes = [2, 4], strides = [1, 1]} : vector<2x64xf32> to vector<2x4xf32>
    %7 = vector.extract_strided_slice %0 {offsets = [0, 18], sizes = [2, 4], strides = [1, 1]} : vector<2x64xf32> to vector<2x4xf32>
    %8 = vector.extract_strided_slice %0 {offsets = [0, 34], sizes = [2, 4], strides = [1, 1]} : vector<2x64xf32> to vector<2x4xf32>
    %9 = vector.extract_strided_slice %0 {offsets = [0, 50], sizes = [2, 4], strides = [1, 1]} : vector<2x64xf32> to vector<2x4xf32>
    %10 = tpu.concatenate %6, %7, %8, %9 in 1 : vector<2x4xf32>, vector<2x4xf32>, vector<2x4xf32>, vector<2x4xf32> -> vector<2x16xf32>
    %11 = vector.extract_strided_slice %0 {offsets = [0, 4], sizes = [2, 4], strides = [1, 1]} : vector<2x64xf32> to vector<2x4xf32>
    %12 = vector.extract_strided_slice %0 {offsets = [0, 20], sizes = [2, 4], strides = [1, 1]} : vector<2x64xf32> to vector<2x4xf32>
    %13 = vector.extract_strided_slice %0 {offsets = [0, 36], sizes = [2, 4], strides = [1, 1]} : vector<2x64xf32> to vector<2x4xf32>
    %14 = vector.extract_strided_slice %0 {offsets = [0, 52], sizes = [2, 4], strides = [1, 1]} : vector<2x64xf32> to vector<2x4xf32>
    %15 = tpu.concatenate %11, %12, %13, %14 in 1 : vector<2x4xf32>, vector<2x4xf32>, vector<2x4xf32>, vector<2x4xf32> -> vector<2x16xf32>
    %16 = vector.extract_strided_slice %0 {offsets = [0, 6], sizes = [2, 4], strides = [1, 1]} : vector<2x64xf32> to vector<2x4xf32>
    %17 = vector.extract_strided_slice %0 {offsets = [0, 22], sizes = [2, 4], strides = [1, 1]} : vector<2x64xf32> to vector<2x4xf32>
    %18 = vector.extract_strided_slice %0 {offsets = [0, 38], sizes = [2, 4], strides = [1, 1]} : vector<2x64xf32> to vector<2x4xf32>
    %19 = vector.extract_strided_slice %0 {offsets = [0, 54], sizes = [2, 4], strides = [1, 1]} : vector<2x64xf32> to vector<2x4xf32>
    %20 = tpu.concatenate %16, %17, %18, %19 in 1 : vector<2x4xf32>, vector<2x4xf32>, vector<2x4xf32>, vector<2x4xf32> -> vector<2x16xf32>
    %21 = vector.extract_strided_slice %0 {offsets = [0, 8], sizes = [2, 4], strides = [1, 1]} : vector<2x64xf32> to vector<2x4xf32>
    %22 = vector.extract_strided_slice %0 {offsets = [0, 24], sizes = [2, 4], strides = [1, 1]} : vector<2x64xf32> to vector<2x4xf32>
    %23 = vector.extract_strided_slice %0 {offsets = [0, 40], sizes = [2, 4], strides = [1, 1]} : vector<2x64xf32> to vector<2x4xf32>
    %24 = vector.extract_strided_slice %0 {offsets = [0, 56], sizes = [2, 4], strides = [1, 1]} : vector<2x64xf32> to vector<2x4xf32>
    %25 = tpu.concatenate %21, %22, %23, %24 in 1 : vector<2x4xf32>, vector<2x4xf32>, vector<2x4xf32>, vector<2x4xf32> -> vector<2x16xf32>
    %26 = vector.extract_strided_slice %0 {offsets = [0, 10], sizes = [2, 4], strides = [1, 1]} : vector<2x64xf32> to vector<2x4xf32>
    %27 = vector.extract_strided_slice %0 {offsets = [0, 26], sizes = [2, 4], strides = [1, 1]} : vector<2x64xf32> to vector<2x4xf32>
    %28 = vector.extract_strided_slice %0 {offsets = [0, 42], sizes = [2, 4], strides = [1, 1]} : vector<2x64xf32> to vector<2x4xf32>
    %29 = vector.extract_strided_slice %0 {offsets = [0, 58], sizes = [2, 4], strides = [1, 1]} : vector<2x64xf32> to vector<2x4xf32>
    %30 = tpu.concatenate %26, %27, %28, %29 in 1 : vector<2x4xf32>, vector<2x4xf32>, vector<2x4xf32>, vector<2x4xf32> -> vector<2x16xf32>
    %31 = vector.extract_strided_slice %0 {offsets = [0, 12], sizes = [2, 4], strides = [1, 1]} : vector<2x64xf32> to vector<2x4xf32>
    %32 = vector.extract_strided_slice %0 {offsets = [0, 28], sizes = [2, 4], strides = [1, 1]} : vector<2x64xf32> to vector<2x4xf32>
    %33 = vector.extract_strided_slice %0 {offsets = [0, 44], sizes = [2, 4], strides = [1, 1]} : vector<2x64xf32> to vector<2x4xf32>
    %34 = vector.extract_strided_slice %0 {offsets = [0, 60], sizes = [2, 4], strides = [1, 1]} : vector<2x64xf32> to vector<2x4xf32>
    %35 = tpu.concatenate %31, %32, %33, %34 in 1 : vector<2x4xf32>, vector<2x4xf32>, vector<2x4xf32>, vector<2x4xf32> -> vector<2x16xf32>
    %36 = tpu.concatenate %5, %10, %15, %20, %25, %30, %35 in 0 : vector<2x16xf32>, vector<2x16xf32>, vector<2x16xf32>, vector<2x16xf32>, vector<2x16xf32>, vector<2x16xf32>, vector<2x16xf32> -> vector<14x16xf32>
    %c0_1 = arith.constant 0 : index
    %c0_2 = arith.constant 0 : index
    %37 = vector.load %arg1[%c0_1, %c0_2] : memref<16x32xf32, #tpu.memory_space<vmem>>, vector<16x32xf32>
    %cst = arith.constant dense<0.000000e+00> : vector<14x32xf32>
    %38 = tpu.matmul %36, %37, %cst {dimension_numbers = #tpu.dot_dimension_numbers<[1], [0], [0], [1], [0, 0, 1, 1], [], []>} : vector<14x16xf32>, vector<16x32xf32>, vector<14x32xf32> -> vector<14x32xf32>
    %c0_3 = arith.constant 0 : index
    %c0_4 = arith.constant 0 : index
    %39 = vector.load %arg3[%c0_3, %c0_4] : memref<1x32xf32, #tpu.memory_space<vmem>>, vector<1x32xf32>
    %40 = vector.broadcast %39 : vector<1x32xf32> to vector<14x32xf32>
    %41 = arith.addf %38, %40 : vector<14x32xf32>
    %c0_5 = arith.constant 0 : index
    %c0_6 = arith.constant 0 : index
    %42 = vector.load %arg2[%c0_5, %c0_6] : memref<32x32xf32, #tpu.memory_space<vmem>>, vector<32x32xf32>
    %cst_7 = arith.constant 0.000000e+00 : f32
    %43 = vector.broadcast %cst_7 : f32 to vector<2x32xf32>
    %44 = vector.extract_strided_slice %41 {offsets = [0, 0], sizes = [2, 32], strides = [1, 1]} : vector<14x32xf32> to vector<2x32xf32>
    %cst_8 = arith.constant dense<0.000000e+00> : vector<2x32xf32>
    %45 = tpu.matmul %43, %42, %cst_8 {dimension_numbers = #tpu.dot_dimension_numbers<[1], [0], [0], [1], [0, 0, 1, 1], [], []>} : vector<2x32xf32>, vector<32x32xf32>, vector<2x32xf32> -> vector<2x32xf32>
    %46 = arith.addf %44, %45 : vector<2x32xf32>
    %47 = math.tanh %46 : vector<2x32xf32>
    %48 = vector.extract_strided_slice %41 {offsets = [2, 0], sizes = [2, 32], strides = [1, 1]} : vector<14x32xf32> to vector<2x32xf32>
    %cst_9 = arith.constant dense<0.000000e+00> : vector<2x32xf32>
    %49 = tpu.matmul %47, %42, %cst_9 {dimension_numbers = #tpu.dot_dimension_numbers<[1], [0], [0], [1], [0, 0, 1, 1], [], []>} : vector<2x32xf32>, vector<32x32xf32>, vector<2x32xf32> -> vector<2x32xf32>
    %50 = arith.addf %48, %49 : vector<2x32xf32>
    %51 = math.tanh %50 : vector<2x32xf32>
    %52 = vector.extract_strided_slice %41 {offsets = [4, 0], sizes = [2, 32], strides = [1, 1]} : vector<14x32xf32> to vector<2x32xf32>
    %cst_10 = arith.constant dense<0.000000e+00> : vector<2x32xf32>
    %53 = tpu.matmul %51, %42, %cst_10 {dimension_numbers = #tpu.dot_dimension_numbers<[1], [0], [0], [1], [0, 0, 1, 1], [], []>} : vector<2x32xf32>, vector<32x32xf32>, vector<2x32xf32> -> vector<2x32xf32>
    %54 = arith.addf %52, %53 : vector<2x32xf32>
    %55 = math.tanh %54 : vector<2x32xf32>
    %56 = vector.extract_strided_slice %41 {offsets = [6, 0], sizes = [2, 32], strides = [1, 1]} : vector<14x32xf32> to vector<2x32xf32>
    %cst_11 = arith.constant dense<0.000000e+00> : vector<2x32xf32>
    %57 = tpu.matmul %55, %42, %cst_11 {dimension_numbers = #tpu.dot_dimension_numbers<[1], [0], [0], [1], [0, 0, 1, 1], [], []>} : vector<2x32xf32>, vector<32x32xf32>, vector<2x32xf32> -> vector<2x32xf32>
    %58 = arith.addf %56, %57 : vector<2x32xf32>
    %59 = math.tanh %58 : vector<2x32xf32>
    %60 = vector.extract_strided_slice %41 {offsets = [8, 0], sizes = [2, 32], strides = [1, 1]} : vector<14x32xf32> to vector<2x32xf32>
    %cst_12 = arith.constant dense<0.000000e+00> : vector<2x32xf32>
    %61 = tpu.matmul %59, %42, %cst_12 {dimension_numbers = #tpu.dot_dimension_numbers<[1], [0], [0], [1], [0, 0, 1, 1], [], []>} : vector<2x32xf32>, vector<32x32xf32>, vector<2x32xf32> -> vector<2x32xf32>
    %62 = arith.addf %60, %61 : vector<2x32xf32>
    %63 = math.tanh %62 : vector<2x32xf32>
    %64 = vector.extract_strided_slice %41 {offsets = [10, 0], sizes = [2, 32], strides = [1, 1]} : vector<14x32xf32> to vector<2x32xf32>
    %cst_13 = arith.constant dense<0.000000e+00> : vector<2x32xf32>
    %65 = tpu.matmul %63, %42, %cst_13 {dimension_numbers = #tpu.dot_dimension_numbers<[1], [0], [0], [1], [0, 0, 1, 1], [], []>} : vector<2x32xf32>, vector<32x32xf32>, vector<2x32xf32> -> vector<2x32xf32>
    %66 = arith.addf %64, %65 : vector<2x32xf32>
    %67 = math.tanh %66 : vector<2x32xf32>
    %68 = vector.extract_strided_slice %41 {offsets = [12, 0], sizes = [2, 32], strides = [1, 1]} : vector<14x32xf32> to vector<2x32xf32>
    %cst_14 = arith.constant dense<0.000000e+00> : vector<2x32xf32>
    %69 = tpu.matmul %67, %42, %cst_14 {dimension_numbers = #tpu.dot_dimension_numbers<[1], [0], [0], [1], [0, 0, 1, 1], [], []>} : vector<2x32xf32>, vector<32x32xf32>, vector<2x32xf32> -> vector<2x32xf32>
    %70 = arith.addf %68, %69 : vector<2x32xf32>
    %71 = math.tanh %70 : vector<2x32xf32>
    %72 = tpu.concatenate %47, %51, %55, %59, %63, %67, %71 in 0 : vector<2x32xf32>, vector<2x32xf32>, vector<2x32xf32>, vector<2x32xf32>, vector<2x32xf32>, vector<2x32xf32>, vector<2x32xf32> -> vector<14x32xf32>
    %c0_15 = arith.constant 0 : index
    %c0_16 = arith.constant 0 : index
    %73 = vector.load %arg4[%c0_15, %c0_16] : memref<32x8xf32, #tpu.memory_space<vmem>>, vector<32x8xf32>
    %cst_17 = arith.constant dense<0.000000e+00> : vector<14x8xf32>
    %74 = tpu.matmul %72, %73, %cst_17 {dimension_numbers = #tpu.dot_dimension_numbers<[1], [0], [0], [1], [0, 0, 1, 1], [], []>} : vector<14x32xf32>, vector<32x8xf32>, vector<14x8xf32> -> vector<14x8xf32>
    %c0_18 = arith.constant 0 : index
    %c0_19 = arith.constant 0 : index
    %75 = vector.load %arg5[%c0_18, %c0_19] : memref<1x8xf32, #tpu.memory_space<vmem>>, vector<1x8xf32>
    %76 = vector.broadcast %75 : vector<1x8xf32> to vector<14x8xf32>
    %77 = arith.addf %74, %76 : vector<14x8xf32>
    %c0_20 = arith.constant 0 : index
    %c0_21 = arith.constant 0 : index
    %78 = vector.load %arg6[%c0_20, %c0_21] : memref<14x8xf32, #tpu.memory_space<vmem>>, vector<14x8xf32>
    tpu.vector_store %arg6[%c0_20, %c0_21], %77 {strides = array<i32>} : memref<14x8xf32, #tpu.memory_space<vmem>>, vector<14x8xf32>,
    return
  }
}

</mosaic_0001>

<bundles_post_ra>
// kernel: recurrent_forward.1
= control target key start
LH: loop header
LB: loop body
LE: loop exit
PB: predicated region body
PF: predicated region fallthrough
CT: control target
= control target key end

     0   :  { %s1080_s23 = smov 102   ;;  %s1081_s24 = smov 126   ;;  %v1096_v1 = vmov 0.0   ;;  %vm1101_vm0 = vmmov 0   ;;  %vm34_vm1 = vcmask 31744   ;;  %vm36_vm2 = vcmask 64512   ;;  %s1339_s0 = inlined_call_operand.vmem [shape: f32[2,64], index: 0, kind: input, shape index: {}]   ;;  %s1340_s2 = inlined_call_operand.vmem [shape: f32[32,32], index: 2, kind: input, shape index: {}]   ;;  %s1341_s1 = inlined_call_operand.vmem [shape: f32[16,32], index: 1, kind: input, shape index: {}]   ;;  %s1342_s3 = inlined_call_operand.vmem [shape: f32[1,32], index: 3, kind: input, shape index: {}]   ;;  %s1343_s4 = inlined_call_operand.vmem [shape: f32[32,8], index: 4, kind: input, shape index: {}]   ;;  %s1344_s5 = inlined_call_operand.vmem [shape: f32[1,8], index: 5, kind: input, shape index: {}]   ;;  %s1345_s6 = inlined_call_operand.vmem [shape: f32[14,8], index: 6, kind: output, shape index: {}]  }
   0x1   :  { %v1144_v0 = vld [vmem:[%s1339_s0] sm:$0x3]  ;;  %s1082_s25 = smov 124   ;;  %s1083_s26 = smov 114   ;;  %952 = vmatprep.subr.mxu1 %v1096_v1  ;;  %v1166_v2 = vld [vmem:[%s1340_s2 + $0x18] sm:$0xff]  ;;  %v145_v3 = vld [vmem:[%s1341_s1 + $0x8] sm:$0xff]  ;;  %960 = vmatprep.mubr.msk.f32.mxu1 %vm1101_vm0, %v1096_v1 }
   0x2   :  { %46 = vrot.lane.b32.xlu1 %v1144_v0, %s1080_s23  ;;  %40 = vrot.lane.b32.xlu0 %v1144_v0, %s1081_s24  ;;  %s1084_s27 = smov 116   ;;  %s1085_s28 = smov 112   ;;  %v1176_v4 = vld [vmem:[%s1340_s2 + $0x10] sm:$0xff]  ;;  %v144_v5 = vld [vmem:[%s1341_s1] sm:$0xff]  ;;  %vm38_vm3 = vcmask 97280   ;;  %vm136_vm4 = vcmask 1041408  }
   0x3   :  { %s1086_s0 = smov 100   ;;  %s1087_s29 = smov 90   ;;  %953 = vmatpush3.msra.mxu1 %v1166_v2  ;;  %945 = vmatprep.subr.mxu0 %v145_v3  ;;  %v1186_v6 = vld [vmem:[%s1340_s2 + $0x8] sm:$0xff]  ;;  %v1194_v7 = vld [vmem:[%s1340_s2] sm:$0xff]  ;;  %vm138_vm5 = vcmask 1043456   ;;  %vm140_vm6 = vcmask 1045504  }
   0x4   :  { %s1088_s30 = smov 110   ;;  %s1089_s7 = smov 122   ;;  %954 = vmatprep.subr.mxu1 %v1096_v1  ;;  %946 = vmatpush3.msra.mxu0 %v145_v3  ;;  %vm153_vm7 = vcmask 130048   ;;  %v888_v3 = vld [vmem:[%s1342_s3] ss:$0 sm:$0xff]  ;;  %vm239_vm8 = vcmask 261120  }
   0x5   :  { %s1090_s8 = smov 106   ;;  %s1091_s9 = smov 118   ;;  %955 = vmatpush3.msra.mxu1 %v1176_v4  ;;  %947 = vmatprep.subr.mxu0 %v144_v5  ;;  %vm882_vm9 = vcmask 62464  }
   0x6   :  { %55 = vrot.lane.b32.xlu1 %v1144_v0, %s1082_s25  ;;  %43 = vrot.lane.b32.xlu0 %v1144_v0, %s1083_s26  ;;  %s1092_s10 = smov 88   ;;  %s1093_s11 = smov 104  }
   0x7   :  { %s1094_s12 = smov 94   ;;  %s1095_s13 = smov 98   ;;  %956 = vmatprep.subr.mxu1 %v1096_v1  ;;  %948 = vmatpush3.msra.mxu0 %v144_v5 }
   0x8   :  { %s1097_s20 = smov 86   ;;  %s1098_s21 = smov 92   ;;  %957 = vmatpush3.msra.mxu1 %v1186_v6  ;;  %963 = vmatprep.subr.mxu0 %v1096_v1 }
   0x9   :  { %s1099_s1 = smov 108   ;;  %958 = vmatprep.subr.mxu1 %v1096_v1  ;;  %s1102_s2 = smov 96  }
   0xa   :  { %25 = vrot.lane.b32.xlu1 %v1144_v0, %s1084_s27  ;;  %58 = vrot.lane.b32.xlu0 %v1144_v0, %s1085_s28  ;;  %s1100_s28 = smov 120  }
   0xb   :  { %959 = vmatpush3.msra.mxu1 %v1194_v7 }
   0xc   :  { %961 = vmatmul.mubr.f32.vlgmr.msra.gmra.mxu1 %v1096_v1  ;;  %974 = vmatprep.subr.mxu1 %v1096_v1 }
   0xd   :  { %975 = vmatpush3.msra.mxu1 %v1166_v2  ;;  %982 = vmatprep.mubr.msk.f32.mxu1 %vm1101_vm0, %v1096_v1 }
   0xe   :  { %61 = vrot.lane.b32.xlu1 %v1144_v0, %s1086_s0  ;;  %49 = vrot.lane.b32.xlu0 %v1144_v0, %s1087_s29  ;;  %s1103_s0 = smov 82   ;;  %s1104_s29 = smov 84  }
   0xf   :  { %976 = vmatprep.subr.mxu1 %v1096_v1 }
  0x10   :  { %977 = vmatpush3.msra.mxu1 %v1176_v4 }
  0x11   :  { %978 = vmatprep.subr.mxu1 %v1096_v1 }
  0x12   :  { %73 = vrot.lane.b32.xlu1 %v1144_v0, %s1088_s30  ;;  %70 = vrot.lane.b32.xlu0 %v1144_v0, %s1089_s7  ;;  %s1105_s30 = smov 80  }
  0x13   :  { %979 = vmatpush3.msra.mxu1 %v1186_v6 }
  0x14   :  { %980 = vmatprep.subr.mxu1 %v1096_v1 }
  0x15   :  { %981 = vmatpush3.msra.mxu1 %v1194_v7 }
  0x16   :  { %103 = vrot.lane.b32.xlu1 %v1144_v0, %s1090_s8  ;;  %100 = vrot.lane.b32.xlu0 %v1144_v0, %s1091_s9 }
  0x17   :  { %996 = vmatprep.subr.mxu1 %v1096_v1 }
  0x1a   :  { %64 = vrot.lane.b32.xlu1 %v1144_v0, %s1092_s10  ;;  %28 = vrot.lane.b32.xlu0 %v1144_v0, %s1093_s11 }
  0x1e   :  { %106 = vrot.lane.b32.xlu1 %v1144_v0, %s1094_s12  ;;  %76 = vrot.lane.b32.xlu0 %v1144_v0, %s1095_s13 }
  0x22   :  { %79 = vrot.lane.b32.xlu1 %v1144_v0, %s1097_s20  ;;  %31 = vrot.lane.b32.xlu0 %v1144_v0, %s1098_s21 }
  0x26   :  { %88 = vrot.lane.b32.xlu1 %v1144_v0, %s1099_s1  ;;  %85 = vrot.lane.b32.xlu0 %v1144_v0, %s1100_s28 }
  0x2a   :  { %91 = vrot.lane.b32.xlu1 %v1144_v0, %s1102_s2  ;;  %109 = vrot.lane.b32.xlu0 %v1144_v0, %s1103_s0 }
  0x2e   :  { %94 = vrot.lane.b32.xlu1 %v1144_v0, %s1104_s29  ;;  %115 = vrot.lane.b32.xlu0 %v1144_v0, %s1105_s30 }
  0x74   :  { %v47_v8 = vpop.permute.xlu1 %46  ;;  %v41_v9 = vpop.permute.xlu0 %40 }
  0x78   :  { %v56_v10 = vpop.permute.xlu1 %55  ;;  %v44_v11 = vpop.permute.xlu0 %43 }
  0x79   :  { %v52_v22 = vsel %vm34_vm1, %v41_v9, %v44_v11 }
  0x7a   :  { %v53_v24 = vsel %vm36_vm2, %v52_v22, %v47_v8 }
  0x7c   :  { %v26_v12 = vpop.permute.xlu1 %25  ;;  %v59_v13 = vpop.permute.xlu0 %58 }
  0x7d   :  { %v67_v23 = vsel %vm34_vm1, %v56_v10, %v59_v13  ;;  %v35_v30 = vsel %vm34_vm1, %v1144_v0, %v26_v12 }
  0x80   :  { %v62_v14 = vpop.permute.xlu1 %61  ;;  %v50_v15 = vpop.permute.xlu0 %49 }
  0x81   :  { %v68_v27 = vsel %vm36_vm2, %v67_v23, %v62_v14  ;;  %v54_v28 = vsel %vm38_vm3, %v53_v24, %v50_v15 }
  0x82   :  { %v122_v32 = vrot.slane %v54_v28, 6 }
  0x84   :  { %v74_v16 = vpop.permute.xlu1 %73  ;;  %v71_v17 = vpop.permute.xlu0 %70 }
  0x85   :  { %v82_v31 = vsel %vm34_vm1, %v71_v17, %v74_v16 }
  0x88   :  { %v104_v18 = vpop.permute.xlu1 %103  ;;  %v101_v19 = vpop.permute.xlu0 %100 }
  0x89   :  { %v112_v46 = vsel %vm34_vm1, %v101_v19, %v104_v18 }
  0x8c   :  { %v65_v20 = vpop.permute.xlu1 %64  ;;  %v29_v21 = vpop.permute.xlu0 %28 }
  0x8d   :  { %v69_v29 = vsel %vm38_vm3, %v68_v27, %v65_v20  ;;  %v37_v33 = vsel %vm36_vm2, %v35_v30, %v29_v21  ;;  %v118_v51 = vsel %vm34_vm1, %v26_v12, %v29_v21 }
  0x8e   :  { %v125_v37 = vrot.slane %v69_v29, 4 }
  0x90   :  { %v107_v25 = vpop.permute.xlu1 %106  ;;  %v77_v26 = vpop.permute.xlu0 %76 }
  0x91   :  { %v83_v34 = vsel %vm36_vm2, %v82_v31, %v77_v26  ;;  %v113_v47 = vsel %vm36_vm2, %v112_v46, %v107_v25 }
  0x94   :  { %v80_v35 = vpop.permute.xlu1 %79  ;;  %v32_v36 = vpop.permute.xlu0 %31 }
  0x95   :  { %v84_v38 = vsel %vm38_vm3, %v83_v34, %v80_v35  ;;  %v39_v39 = vsel %vm38_vm3, %v37_v33, %v32_v36  ;;  %v119_v53 = vsel %vm36_vm2, %v118_v51, %v32_v36 }
  0x96   :  { %v128_v40 = vrot.slane %v84_v38, 2  ;;  %v137_v41 = vsel %vm136_vm4, %v39_v39, %v122_v32 }
  0x97   :  { %v139_v42 = vsel %vm138_vm5, %v137_v41, %v125_v37  ;;  %v790_v41 = vld [vmem:[%s1343_s4 + $0x8] sm:$0xff] }
  0x98   :  { %v89_v43 = vpop.permute.xlu1 %88  ;;  %v86_v44 = vpop.permute.xlu0 %85  ;;  %v141_v45 = vsel %vm140_vm6, %v139_v42, %v128_v40  ;;  %v791_v40 = vld [vmem:[%s1343_s4 + $0x10] sm:$0xff]  ;;  %v789_v42 = vld [vmem:[%s1343_s4] sm:$0xff] }
  0x99   :  { %949 = vmatprep.mubr.msk.f32.mxu0 %vm153_vm7, %v141_v45  ;;  %v97_v52 = vsel %vm34_vm1, %v86_v44, %v89_v43 }
  0x9c   :  { %v92_v48 = vpop.permute.xlu1 %91  ;;  %v110_v49 = vpop.permute.xlu0 %109 }
  0x9d   :  { %v114_v50 = vsel %vm38_vm3, %v113_v47, %v110_v49  ;;  %v98_v54 = vsel %vm36_vm2, %v97_v52, %v92_v48 }
  0x9e   :  { %v131_v55 = vrot.slane %v114_v50, 6  ;;  %v897_v50 = vld [vmem:[%s1344_s5] ss:$0 sm:$0xff] }
  0xa0   :  { %v95_v56 = vpop.permute.xlu1 %94  ;;  %v116_v57 = vpop.permute.xlu0 %115 }
  0xa1   :  { %v99_v58 = vsel %vm38_vm3, %v98_v54, %v95_v56  ;;  %v120_v59 = vsel %vm38_vm3, %v119_v53, %v116_v57 }
  0xa2   :  { %v142_v60 = vsel %vm136_vm4, %v99_v58, %v131_v55  ;;  %v134_v61 = vrot.slane %v120_v59, 4 }
  0xa4   :  { %v143_v62 = vsel %vm138_vm5, %v142_v60, %v134_v61 }
  0xa5   :  { %950 = vmatmul.mubr.msk.f32.vlgmr.msra.gmra.mxu0 %vm153_vm7, %v143_v62 }
  0xa6   :  { %964 = vmatpush3.msra.mxu0 %v1166_v2  ;;  %971 = vmatprep.mubr.msk.f32.mxu0 %vm1101_vm0, %v1096_v1 }
  0xa7   :  { %965 = vmatprep.subr.mxu0 %v1096_v1 }
  0xa8   :  { %966 = vmatpush3.msra.mxu0 %v1176_v4 }
  0xa9   :  { %967 = vmatprep.subr.mxu0 %v1096_v1 }
  0xaa   :  { %968 = vmatpush3.msra.mxu0 %v1186_v6 }
  0xab   :  { %969 = vmatprep.subr.mxu0 %v1096_v1 }
  0xac   :  { %970 = vmatpush3.msra.mxu0 %v1194_v7 }
  0xad   :  { %985 = vmatprep.subr.mxu0 %v1096_v1 }
  0xcc   :  { %v309_v63 = vpop.f32.mrf.mxu1 }
  0xce   :  { %v962_v0 = vpop.f32.mrf.mxu1 }
 0x165   :  { %v951_v5 = vpop.f32.mrf.mxu0 }
 0x166   :  { %v1261_v8 = vadd.f32 %v951_v5, %v888_v3 }
 0x167   :  { %v226_v9 = vpop.f32.mrf.mxu0 }
 0x168   :  { %v227_v10 = vadd.f32 %v888_v3, %v226_v9 }
 0x16a   :  { %v313_v11 = vadd.f32 %v309_v63, %v227_v10 }
 0x16c   :  { %1066 = vtanh.f32 %v313_v11 }
 0x179   :  { %v1067_v12 = vpop.eup %1066 }
 0x17a   :  { %972 = vmatmul.mubr.msk.f32.vlgmr.msra.gmra.mxu0 %vm239_vm8, %v1067_v12 }
 0x17b   :  { %986 = vmatpush3.msra.mxu0 %v1166_v2  ;;  %993 = vmatprep.mubr.msk.f32.mxu0 %vm1101_vm0, %v1096_v1 }
 0x17c   :  { %987 = vmatprep.subr.mxu0 %v1096_v1 }
 0x17d   :  { %988 = vmatpush3.msra.mxu0 %v1176_v4 }
 0x17e   :  { %989 = vmatprep.subr.mxu0 %v1096_v1 }
 0x17f   :  { %990 = vmatpush3.msra.mxu0 %v1186_v6 }
 0x180   :  { %991 = vmatprep.subr.mxu0 %v1096_v1 }
 0x181   :  { %992 = vmatpush3.msra.mxu0 %v1194_v7 }
 0x182   :  { %1007 = vmatprep.subr.mxu0 %v1096_v1 }
 0x23a   :  { %v384_v13 = vpop.f32.mrf.mxu0 }
 0x23b   :  { %v389_v14 = vrot.slane %v384_v13, 6 }
 0x23c   :  { %v973_v15 = vpop.f32.mrf.mxu0 }
 0x23d   :  { %v391_v16 = vadd.f32 %v389_v14, %v227_v10 }
 0x23f   :  { %1068 = vtanh.f32 %v391_v16 }
 0x24c   :  { %v1069_v17 = vpop.eup %1068 }
 0x24d   :  { %v394_v18 = vrot.slane %v1069_v17, 2  ;;  %v784_v24 = vsel %vm136_vm4, %v1067_v12, %v1069_v17 }
 0x24f   :  { %983 = vmatmul.mubr.msk.f32.vlgmr.msra.gmra.mxu1 %vm239_vm8, %v394_v18 }
 0x250   :  { %997 = vmatpush3.msra.mxu1 %v1166_v2  ;;  %1004 = vmatprep.mubr.msk.f32.mxu1 %vm1101_vm0, %v1096_v1 }
 0x251   :  { %998 = vmatprep.subr.mxu1 %v1096_v1 }
 0x252   :  { %999 = vmatpush3.msra.mxu1 %v1176_v4 }
 0x253   :  { %1000 = vmatprep.subr.mxu1 %v1096_v1 }
 0x254   :  { %1001 = vmatpush3.msra.mxu1 %v1186_v6 }
 0x255   :  { %1002 = vmatprep.subr.mxu1 %v1096_v1 }
 0x256   :  { %1003 = vmatpush3.msra.mxu1 %v1194_v7 }
 0x257   :  { %1018 = vmatprep.subr.mxu1 %v1096_v1 }
 0x30f   :  { %v463_v19 = vpop.f32.mrf.mxu1 }
 0x310   :  { %v468_v20 = vrot.slane %v463_v19, 4 }
 0x311   :  { %v984_v21 = vpop.f32.mrf.mxu1 }
 0x312   :  { %v470_v22 = vadd.f32 %v468_v20, %v227_v10 }
 0x314   :  { %1070 = vtanh.f32 %v470_v22 }
 0x321   :  { %v1071_v23 = vpop.eup %1070 }
 0x322   :  { %v473_v25 = vrot.slane %v1071_v23, 4  ;;  %v785_v26 = vsel %vm138_vm5, %v784_v24, %v1071_v23 }
 0x324   :  { %994 = vmatmul.mubr.msk.f32.vlgmr.msra.gmra.mxu0 %vm239_vm8, %v473_v25 }
 0x325   :  { %1008 = vmatpush3.msra.mxu0 %v1166_v2  ;;  %1015 = vmatprep.mubr.msk.f32.mxu0 %vm1101_vm0, %v1096_v1 }
 0x326   :  { %1009 = vmatprep.subr.mxu0 %v1096_v1 }
 0x327   :  { %1010 = vmatpush3.msra.mxu0 %v1176_v4 }
 0x328   :  { %1011 = vmatprep.subr.mxu0 %v1096_v1 }
 0x329   :  { %1012 = vmatpush3.msra.mxu0 %v1186_v6 }
 0x32a   :  { %1013 = vmatprep.subr.mxu0 %v1096_v1 }
 0x32b   :  { %1014 = vmatpush3.msra.mxu0 %v1194_v7 }
 0x3e4   :  { %v542_v27 = vpop.f32.mrf.mxu0 }
 0x3e5   :  { %v547_v28 = vrot.slane %v542_v27, 2 }
 0x3e6   :  { %v995_v29 = vpop.f32.mrf.mxu0 }
 0x3e7   :  { %v549_v30 = vadd.f32 %v547_v28, %v227_v10 }
 0x3e9   :  { %1072 = vtanh.f32 %v549_v30 }
 0x3f6   :  { %v1073_v31 = vpop.eup %1072 }
 0x3f7   :  { %v552_v32 = vrot.slane %v1073_v31, 6  ;;  %v786_v33 = vsel %vm140_vm6, %v785_v26, %v1073_v31 }
 0x3f9   :  { %1005 = vmatmul.mubr.msk.f32.vlgmr.msra.gmra.mxu1 %vm239_vm8, %v552_v32 }
 0x3fa   :  { %1019 = vmatpush3.msra.mxu1 %v1166_v2  ;;  %1026 = vmatprep.mubr.msk.f32.mxu1 %vm1101_vm0, %v1096_v1 }
 0x3fb   :  { %1020 = vmatprep.subr.mxu1 %v1096_v1 }
 0x3fc   :  { %1021 = vmatpush3.msra.mxu1 %v1176_v4 }
 0x3fd   :  { %1022 = vmatprep.subr.mxu1 %v1096_v1 }
 0x3fe   :  { %1023 = vmatpush3.msra.mxu1 %v1186_v6 }
 0x3ff   :  { %1024 = vmatprep.subr.mxu1 %v1096_v1 }
 0x400   :  { %1025 = vmatpush3.msra.mxu1 %v1194_v7  ;;  %v792_v7 = vld [vmem:[%s1343_s4 + $0x18] sm:$0xff] }
 0x401   :  { %1029 = vmatprep.subr.mxu0 %v792_v7 }
 0x4b9   :  { %v621_v34 = vpop.f32.mrf.mxu1 }
 0x4ba   :  { %v625_v35 = vadd.f32 %v621_v34, %v1261_v8 }
 0x4bb   :  { %v1006_v36 = vpop.f32.mrf.mxu1 }
 0x4bc   :  { %1074 = vtanh.f32 %v625_v35 }
 0x4c9   :  { %v1075_v2 = vpop.eup %1074 }
 0x4ca   :  { %1016 = vmatmul.mubr.msk.f32.vlgmr.msra.gmra.mxu0 %vm239_vm8, %v1075_v2 }
 0x4cb   :  { %1037 = vmatprep.mubr.msk.f32.mxu0 %vm239_vm8, %v786_v33  ;;  %1030 = vmatpush3.msra.mxu0 %v792_v7 }
 0x4cc   :  { %1031 = vmatprep.subr.mxu0 %v791_v40 }
 0x4cd   :  { %1032 = vmatpush3.msra.mxu0 %v791_v40 }
 0x4ce   :  { %1033 = vmatprep.subr.mxu0 %v790_v41 }
 0x4cf   :  { %1034 = vmatpush3.msra.mxu0 %v790_v41 }
 0x4d0   :  { %1035 = vmatprep.subr.mxu0 %v789_v42 }
 0x4d1   :  { %1036 = vmatpush3.msra.mxu0 %v789_v42 }
 0x58a   :  { %v696_v37 = vpop.f32.mrf.mxu0 }
 0x58b   :  { %v701_v4 = vrot.slane %v696_v37, 6 }
 0x58c   :  { %v1017_v38 = vpop.f32.mrf.mxu0 }
 0x58d   :  { %v703_v39 = vadd.f32 %v701_v4, %v1261_v8 }
 0x58f   :  { %1076 = vtanh.f32 %v703_v39 }
 0x59c   :  { %v1077_v6 = vpop.eup %1076 }
 0x59d   :  { %v706_v1 = vrot.slane %v1077_v6, 2  ;;  %v787_v48 = vsel %vm136_vm4, %v1075_v2, %v1077_v6 }
 0x59f   :  { %1027 = vmatmul.mubr.msk.f32.vlgmr.msra.gmra.mxu1 %vm239_vm8, %v706_v1 }
 0x65f   :  { %v775_v43 = vpop.f32.mrf.mxu1 }
 0x660   :  { %v780_v44 = vrot.slane %v775_v43, 4 }
 0x661   :  { %v1028_v45 = vpop.f32.mrf.mxu1 }
 0x662   :  { %v782_v46 = vadd.f32 %v780_v44, %v1261_v8 }
 0x664   :  { %1078 = vtanh.f32 %v782_v46 }
 0x671   :  { %v1079_v47 = vpop.eup %1078 }
 0x672   :  { %v788_v49 = vsel %vm138_vm5, %v787_v48, %v1079_v47 }
 0x673   :  { %1038 = vmatmul.mubr.msk.f32.vlgmr.msra.gmra.mxu0 %vm239_vm8, %v788_v49 }
 0x733   :  { %v1039_v51 = vpop.f32.mrf.mxu0 }
 0x734   :  { %v878_v52 = vadd.f32 %v1039_v51, %v897_v50 }
 0x735   :  { %v872_v53 = vpop.f32.mrf.mxu0 }
 0x736   :  { %883 = vst.msk [vmem:[%s1345_s6 + $0x8] sm:$0x3f] %vm882_vm9, %v878_v52  ;;  %v873_v54 = vadd.f32 %v897_v50, %v872_v53 }
 0x738   :  { %881 = vst.msk [vmem:[%s1345_s6] sm:$0xff] %vm36_vm2, %v873_v54 }

</bundles_post_ra>
